<compile_context>
chip_gen: v7x
topology: tpu7x:2x2x1
jax: 0.10.0
libtpu: 0.0.40
codegen_flags: <defaults>
</compile_context>

<pallas_src>
import functools

import jax
import jax.numpy as jnp
import numpy as np
from jax.experimental import pallas as pl
from jax.experimental.pallas import tpu as pltpu


def _attentive_pool_kernel(mask_ref, x_ref, w1_ref, bw_ref, *rest, use_mapping):
    # mask_ref: (TB, S) f32            x_ref : (TB, S, H) compute_dtype (bf16)
    # w1_ref  : (H, H)  bf16 (W1^T)    bw_ref: (2, H) f32  -> row0=b1, row1=w2
    # [wm_ref : (H, O)  bf16 (Wm^T)    bm_ref: (1, O) f32] (only if use_mapping)
    # o_ref   : (TB, O) f32
    if use_mapping:
        wm_ref, bm_ref, o_ref = rest
    else:
        (o_ref,) = rest

    tb, s, h = x_ref.shape
    x = x_ref[...]                                            # (TB,S,H) bf16

    bw = bw_ref[...]                                          # (2,H) f32
    b1 = bw[0:1, :]                                           # (1,H)
    w2 = bw[1:2, :]                                           # (1,H)

    # ---- attn: Linear(H,H) -> tanh -> Linear(H,1) ---------------------------
    # One (TB*S,H)x(H,H) bf16 MXU matmul per grid step, f32 accumulation.
    # S is padded wrapper-side to a multiple of 8 so this reshape is a view.
    hidden = jnp.tanh(
        jnp.dot(x.reshape(tb * s, h), w1_ref[...],
                preferred_element_type=jnp.float32)
        + b1)                                                 # (TB*S,H) f32
    # Second layer is a dot with a single row vector -> lane (XLU) reduce.
    # NOTE: the Linear(H,1) bias is intentionally dropped: softmax is
    # shift-invariant, so adding a constant to every score is an exact no-op.
    e = jnp.sum(hidden.reshape(tb, s, h) * w2, axis=-1)       # (TB,S) f32

    # ---- masked softmax over the sequence axis (lanes), all f32 -------------
    e = jnp.where(mask_ref[...] > 0.0, e, -1e20)
    e = e - jnp.max(e, axis=-1, keepdims=True)
    p = jnp.exp(e)
    inv = pl.reciprocal(jnp.sum(p, axis=-1, keepdims=True), approx=True)
    a = p * inv                                               # (TB,S) f32

    # ---- weighted sum over the sequence (== bmm(a, inputs)) -----------------
    if s > 128:
        # Large S: batched (1,S)x(S,H) MXU contraction (probs cast to x dtype;
        # slight drift vs an f32 einsum is an accepted trade on long sequences).
        pooled = jax.lax.dot_general(
            a.astype(x.dtype), x,
            dimension_numbers=(((1,), (1,)), ((0,), (0,))),
            preferred_element_type=jnp.float32)               # (TB,H) f32
    else:
        pooled = jnp.sum(a[:, :, None] * x, axis=1)           # f32 (promote)

    # ---- mapping_function: Linear(H,O) -> tanh (only when H != O) -----------
    if use_mapping:
        pooled = jnp.tanh(
            jnp.dot(pooled.astype(wm_ref.dtype), wm_ref[...],
                    preferred_element_type=jnp.float32)
            + bm_ref[...])                                    # (TB,O) f32

    o_ref[...] = pooled.astype(o_ref.dtype)


def _choose_block_b(batch, seq, hidden, target_rows=1024):
    """Pick TB (batch rows per grid step).

    Preferences: (a) TB divides B exactly (avoids a wrapper-side pad copy of
    x), (b) multi-block TB is a multiple of 8 (sublane-aligned (TB,S)/(TB,O)
    blocks), (c) >=2 grid blocks when possible (megacore / v7x 2 TCs),
    (d) TB*S near target_rows (fills MXU M tiles, amortises per-step overhead),
    (e) the x block + f32 temporaries fit a v7x-safe VMEM budget.
    """
    seq = max(int(seq), 1)
    # ~12 bytes per x element: 2x bf16 pipeline buffers + f32 hidden temp +
    # f32 promote temp; keep the whole thing under ~24 MiB (v7x headroom).
    rows_cap = max(8, (24 << 20) // max(hidden * 12, 1))
    tb_cap = max(1, rows_cap // seq)
    target_tb = max(1, min(max(1, target_rows // seq), tb_cap))

    if batch <= 8:
        return batch                      # single full-batch block (always legal)

    cands = [tb for tb in ([batch] + [d for d in range(8, batch, 8)
                                      if batch % d == 0])
             if tb <= max(tb_cap, 8)]
    if not cands:
        # Rare fallback: no clean divisor fits; pad the batch (handled in the
        # wrapper) with a sublane-aligned block.
        cands = [min(batch, max(8, (tb_cap // 8) * 8))]

    def score(tb):
        n_blocks = -(-batch // tb)
        pad = n_blocks * tb - batch       # prefer no wrapper-side pad
        single = 1 if n_blocks < 2 else 0 # prefer >=2 blocks (both TCs busy)
        return (pad, single, abs(tb - target_tb))

    return min(cands, key=score)


def _estimate_vmem_bytes(tb, s, h, o, use_mapping):
    """Rough VMEM footprint: double-buffered blocks + in-kernel f32 temps."""
    blocks = (tb * s * h * 2          # x (bf16)
              + tb * s * 4            # mask (f32)
              + tb * o * 4            # out (f32)
              + h * h * 2             # W1^T (bf16)
              + 2 * h * 4)            # [b1; w2] (f32)
    if use_mapping:
        blocks += h * o * 2 + o * 4
    temps = tb * s * h * 4 * 2 + tb * s * 4 * 4 + tb * h * 4 + tb * o * 4
    return 2 * blocks + temps


def attentive_pooling(x, mask, params, *, compute_dtype=jnp.bfloat16,
                      block_b=None):
    """x: (B,S,H), mask: (B,S) bool, params: dict. Returns (B,O) f32.

    Callers should ideally pass x already in `compute_dtype`; otherwise it is
    cast once wrapper-side (one extra HBM pass).
    """
    B, S, H = x.shape
    O = params["wmt"].shape[1]
    use_mapping = (H != O)

    x_c = x if x.dtype == compute_dtype else x.astype(compute_dtype)
    mask_f = mask.astype(jnp.float32)

    # Pad S to a sublane multiple so the in-kernel reshape is layout-preserving
    # (padded positions are masked out, so this is an exact no-op).
    # TODO(synk): for bf16 x, S % 16 == 0 avoids packed-row relayout entirely.
    S_pad = ((S + 7) // 8) * 8
    if S_pad != S:
        x_c = jnp.pad(x_c, ((0, 0), (0, S_pad - S), (0, 0)))
        mask_f = jnp.pad(mask_f, ((0, 0), (0, S_pad - S)))

    # MXU operands in compute_dtype (halves their DMA bytes); biases / the
    # Linear(H,1) row stay f32. b1 and w2 travel as one (2,H) block; the
    # Linear(H,1) bias b2 is dropped (softmax shift invariance).
    w1t = params["w1t"].astype(compute_dtype)
    bw = jnp.concatenate([params["b1"].reshape(1, H),
                          params["w2row"].reshape(1, H)],
                         axis=0).astype(jnp.float32)

    tb = block_b if block_b is not None else _choose_block_b(B, S_pad, H)
    n_blocks = pl.cdiv(B, tb)
    b_pad = n_blocks * tb
    if b_pad != B:
        # Rare fallback: padded rows are fully masked -> uniform softmax over
        # zero rows -> 0; they are sliced away below.
        x_c = jnp.pad(x_c, ((0, b_pad - B), (0, 0), (0, 0)))
        mask_f = jnp.pad(mask_f, ((0, b_pad - B), (0, 0)))

    in_specs = [
        pl.BlockSpec((tb, S_pad), lambda b: (b, 0)),          # mask
        pl.BlockSpec((tb, S_pad, H), lambda b: (b, 0, 0)),    # x
        pl.BlockSpec((H, H), lambda b: (0, 0)),               # W1^T
        pl.BlockSpec((2, H), lambda b: (0, 0)),               # [b1; w2]
    ]
    args = [mask_f, x_c, w1t, bw]
    if use_mapping:                                            # only DMA'd when used
        in_specs += [
            pl.BlockSpec((H, O), lambda b: (0, 0)),           # Wm^T
            pl.BlockSpec((1, O), lambda b: (0, 0)),           # bm
        ]
        args += [params["wmt"].astype(compute_dtype),
                 params["bm"].reshape(1, O).astype(jnp.float32)]

    # Raise the scoped-VMEM limit only when the estimated footprint needs it
    # (keeps the default on small shapes; stays within v7x's 64 MiB part).
    est = _estimate_vmem_bytes(tb, S_pad, H, O, use_mapping)
    vmem_limit = (int(min(64 << 20, est * 1.25 + (2 << 20)))
                  if est > (12 << 20) else None)

    kernel = functools.partial(_attentive_pool_kernel, use_mapping=use_mapping)

    out = pl.pallas_call(
        kernel,
        out_shape=jax.ShapeDtypeStruct((b_pad, O), jnp.float32),
        grid_spec=pltpu.PrefetchScalarGridSpec(
            num_scalar_prefetch=0,
            grid=(n_blocks,),
            in_specs=in_specs,
            out_specs=pl.BlockSpec((tb, O), lambda b: (b, 0)),
        ),
        compiler_params=pltpu.CompilerParams(
            dimension_semantics=("parallel",),
            vmem_limit_bytes=vmem_limit),
    )(*args)

    if b_pad != B:
        out = out[:B]
    return out


def attentive_pooling_ref(x, mask, params, compute_dtype=jnp.bfloat16):
    """Pure-JAX reference mirroring the PyTorch forward.

    MXU operands (x, weights) use the same compute_dtype rounding as the kernel
    so the comparison isolates kernel correctness from the intentional
    mixed-precision policy; all other math is f32 like the PyTorch module.
    """
    cd = compute_dtype
    xr = x.astype(cd).astype(jnp.float32)        # same rounding of x the kernel sees
    h = jnp.tanh(jnp.dot(xr.astype(cd), params["w1t"].astype(cd),
                         preferred_element_type=jnp.float32) + params["b1"])
    e = jnp.sum(h * params["w2row"], axis=-1) + params["b2"][0]     # (B,S)
    e = e + (1.0 - mask.astype(jnp.float32)) * (-1e20)
    a = jax.nn.softmax(e, axis=1)                                   # (B,S)
    pooled = jnp.einsum("bs,bsh->bh", a, xr)                        # (B,H)
    H, O = params["wmt"].shape
    if H != O:
        pooled = jnp.tanh(jnp.dot(pooled.astype(cd), params["wmt"].astype(cd),
                                  preferred_element_type=jnp.float32)
                          + params["bm"])
    return pooled


def init_params(key, hidden_size, output_size):
    k1, k2, k3, k4, k5, k6 = jax.random.split(key, 6)
    scale = 0.1
    return {
        # attn: Linear(H,H) (stored transposed), Tanh, Linear(H,1)
        "w1t": scale * jax.random.normal(k1, (hidden_size, hidden_size), jnp.float32),
        "b1": scale * jax.random.normal(k2, (hidden_size,), jnp.float32),
        "w2row": scale * jax.random.normal(k3, (1, hidden_size), jnp.float32),
        "b2": scale * jax.random.normal(k4, (1,), jnp.float32),
        # mapping_function: Linear(H,O) (transposed), Tanh  (used iff H != O)
        "wmt": scale * jax.random.normal(k5, (hidden_size, output_size), jnp.float32),
        "bm": scale * jax.random.normal(k6, (output_size,), jnp.float32),
    }


if __name__ == "__main__":
    # Small shapes consistent with the module: batch=2, seq=8, hidden=32, output=64
    B, S, H, O = 2, 8, 32, 64
    key = jax.random.PRNGKey(0)
    kx, km, kp = jax.random.split(key, 3)

    x = jax.random.normal(kx, (B, S, H), jnp.float32)
    # Boolean mask with at least one valid position per row.
    mask = jax.random.uniform(km, (B, S)) > 0.3
    mask = mask.at[:, 0].set(True)

    params = init_params(kp, H, O)

    out = attentive_pooling(x, mask, params)
    out = jax.block_until_ready(out)

    ref = attentive_pooling_ref(x, mask, params)
    # Tolerance covers the EUP approximate reciprocal in the softmax normalizer
    # and bf16 MXU operands (same rounding applied in the reference).
    np.testing.assert_allclose(np.asarray(out), np.asarray(ref),
                               rtol=5e-3, atol=5e-3)
    assert out.shape == (B, O)
    print("KERNEL_OK")
</pallas_src>

<mosaic_0001>
module attributes {stable_mosaic.version = 11 : i64} {
  func.func @_attentive_pool_kernel(%arg0: i32, %arg1: memref<2x8xf32, #tpu.memory_space<vmem>>, %arg2: memref<2x8x32xbf16, #tpu.memory_space<vmem>>, %arg3: memref<32x32xbf16, #tpu.memory_space<vmem>>, %arg4: memref<2x32xf32, #tpu.memory_space<vmem>>, %arg5: memref<32x64xbf16, #tpu.memory_space<vmem>>, %arg6: memref<1x64xf32, #tpu.memory_space<vmem>>, %arg7: memref<2x64xf32, #tpu.memory_space<vmem>>) attributes {dimension_semantics = [#tpu.dimension_semantics<parallel>], iteration_bounds = array<i64: 1>, scalar_prefetch = 0 : i64, scratch_operands = 0 : i64, tpu.core_type = #tpu.core_type<tc>, window_params = [{transform_indices = @transform_0, window_bounds = array<i64: 2, 8>}, {transform_indices = @transform_1, window_bounds = array<i64: 2, 8, 32>}, {pipeline_mode = #tpu.pipeline_mode<synchronous>, transform_indices = @transform_2, window_bounds = array<i64: 32, 32>}, {pipeline_mode = #tpu.pipeline_mode<synchronous>, transform_indices = @transform_3, window_bounds = array<i64: 2, 32>}, {pipeline_mode = #tpu.pipeline_mode<synchronous>, transform_indices = @transform_4, window_bounds = array<i64: 32, 64>}, {pipeline_mode = #tpu.pipeline_mode<synchronous>, transform_indices = @transform_5, window_bounds = array<i64: 1, 64>}, {transform_indices = @transform_6, window_bounds = array<i64: 2, 64>}]} {
    %c0 = arith.constant 0 : index
    %c0_0 = arith.constant 0 : index
    %c0_1 = arith.constant 0 : index
    %0 = vector.load %arg2[%c0, %c0_0, %c0_1] : memref<2x8x32xbf16, #tpu.memory_space<vmem>>, vector<2x8x32xbf16>
    %c0_2 = arith.constant 0 : index
    %c0_3 = arith.constant 0 : index
    %1 = vector.load %arg4[%c0_2, %c0_3] : memref<2x32xf32, #tpu.memory_space<vmem>>, vector<2x32xf32>
    %2 = vector.extract_strided_slice %1 {offsets = [0, 0], sizes = [1, 32], strides = [1, 1]} : vector<2x32xf32> to vector<1x32xf32>
    %3 = vector.extract_strided_slice %1 {offsets = [1, 0], sizes = [1, 32], strides = [1, 1]} : vector<2x32xf32> to vector<1x32xf32>
    %4 = vector.shape_cast %0 : vector<2x8x32xbf16> to vector<16x32xbf16>
    %c0_4 = arith.constant 0 : index
    %c0_5 = arith.constant 0 : index
    %5 = vector.load %arg3[%c0_4, %c0_5] : memref<32x32xbf16, #tpu.memory_space<vmem>>, vector<32x32xbf16>
    %cst = arith.constant dense<0.000000e+00> : vector<16x32xf32>
    %6 = tpu.matmul %4, %5, %cst {dimension_numbers = #tpu.dot_dimension_numbers<[1], [0], [0], [1], [0, 0, 1, 1], [], []>} : vector<16x32xbf16>, vector<32x32xbf16>, vector<16x32xf32> -> vector<16x32xf32>
    %7 = vector.broadcast %2 : vector<1x32xf32> to vector<16x32xf32>
    %8 = arith.addf %6, %7 : vector<16x32xf32>
    %9 = math.tanh %8 : vector<16x32xf32>
    %10 = vector.shape_cast %9 : vector<16x32xf32> to vector<2x8x32xf32>
    %11 = vector.shape_cast %3 : vector<1x32xf32> to vector<1x1x32xf32>
    %12 = vector.broadcast %11 : vector<1x1x32xf32> to vector<2x8x32xf32>
    %13 = arith.mulf %10, %12 : vector<2x8x32xf32>
    %cst_6 = arith.constant dense<0.000000e+00> : vector<2x8xf32>
    %14 = vector.multi_reduction <add>, %13, %cst_6 [2] : vector<2x8x32xf32> to vector<2x8xf32>
    %c0_7 = arith.constant 0 : index
    %c0_8 = arith.constant 0 : index
    %15 = vector.load %arg1[%c0_7, %c0_8] : memref<2x8xf32, #tpu.memory_space<vmem>>, vector<2x8xf32>
    %cst_9 = arith.constant 0.000000e+00 : f32
    %16 = vector.broadcast %cst_9 : f32 to vector<2x8xf32>
    %17 = arith.cmpf ogt, %15, %16 : vector<2x8xf32>
    %cst_10 = arith.constant -1.000000e+20 : f32
    %18 = vector.broadcast %cst_10 : f32 to vector<2x8xf32>
    %19 = arith.select %17, %14, %18 : vector<2x8xi1>, vector<2x8xf32>
    %cst_11 = arith.constant dense<0xFF800000> : vector<2xf32>
    %20 = vector.multi_reduction <maximumf>, %19, %cst_11 [1] : vector<2x8xf32> to vector<2xf32>
    %21 = vector.shape_cast %20 : vector<2xf32> to vector<2x1xf32>
    %22 = vector.broadcast %21 : vector<2x1xf32> to vector<2x8xf32>
    %23 = arith.subf %19, %22 : vector<2x8xf32>
    %24 = math.exp %23 : vector<2x8xf32>
    %cst_12 = arith.constant dense<0.000000e+00> : vector<2xf32>
    %25 = vector.multi_reduction <add>, %24, %cst_12 [1] : vector<2x8xf32> to vector<2xf32>
    %26 = vector.shape_cast %25 : vector<2xf32> to vector<2x1xf32>
    %27 = tpu.reciprocal %26 {approx = true} : vector<2x1xf32> -> vector<2x1xf32>
    %28 = vector.broadcast %27 : vector<2x1xf32> to vector<2x8xf32>
    %29 = arith.mulf %24, %28 : vector<2x8xf32>
    %30 = vector.shape_cast %29 : vector<2x8xf32> to vector<2x8x1xf32>
    %31 = arith.extf %0 : vector<2x8x32xbf16> to vector<2x8x32xf32>
    %32 = vector.broadcast %30 : vector<2x8x1xf32> to vector<2x8x32xf32>
    %33 = arith.mulf %32, %31 : vector<2x8x32xf32>
    %cst_13 = arith.constant dense<0.000000e+00> : vector<2x32xf32>
    %34 = vector.multi_reduction <add>, %33, %cst_13 [1] : vector<2x8x32xf32> to vector<2x32xf32>
    %35 = arith.truncf %34 : vector<2x32xf32> to vector<2x32xbf16>
    %c0_14 = arith.constant 0 : index
    %c0_15 = arith.constant 0 : index
    %36 = vector.load %arg5[%c0_14, %c0_15] : memref<32x64xbf16, #tpu.memory_space<vmem>>, vector<32x64xbf16>
    %cst_16 = arith.constant dense<0.000000e+00> : vector<2x64xf32>
    %37 = tpu.matmul %35, %36, %cst_16 {dimension_numbers = #tpu.dot_dimension_numbers<[1], [0], [0], [1], [0, 0, 1, 1], [], []>} : vector<2x32xbf16>, vector<32x64xbf16>, vector<2x64xf32> -> vector<2x64xf32>
    %c0_17 = arith.constant 0 : index
    %c0_18 = arith.constant 0 : index
    %38 = vector.load %arg6[%c0_17, %c0_18] : memref<1x64xf32, #tpu.memory_space<vmem>>, vector<1x64xf32>
    %39 = vector.broadcast %38 : vector<1x64xf32> to vector<2x64xf32>
    %40 = arith.addf %37, %39 : vector<2x64xf32>
    %41 = math.tanh %40 : vector<2x64xf32>
    %c0_19 = arith.constant 0 : index
    %c0_20 = arith.constant 0 : index
    %42 = vector.load %arg7[%c0_19, %c0_20] : memref<2x64xf32, #tpu.memory_space<vmem>>, vector<2x64xf32>
    tpu.vector_store %arg7[%c0_19, %c0_20], %41 {strides = array<i32>} : memref<2x64xf32, #tpu.memory_space<vmem>>, vector<2x64xf32>,
    return
  }
  func.func @transform_0(%arg0: i32) -> (i32, i32) {
    %c0_i32 = arith.constant 0 : i32
    %c0_i32_0 = arith.constant 0 : i32
    return %arg0, %c0_i32 : i32, i32
  }
  func.func @transform_1(%arg0: i32) -> (i32, i32, i32) {
    %c0_i32 = arith.constant 0 : i32
    %c0_i32_0 = arith.constant 0 : i32
    %c0_i32_1 = arith.constant 0 : i32
    return %arg0, %c0_i32, %c0_i32_0 : i32, i32, i32
  }
  func.func @transform_2(%arg0: i32) -> (i32, i32) {
    %c0_i32 = arith.constant 0 : i32
    %c0_i32_0 = arith.constant 0 : i32
    %c0_i32_1 = arith.constant 0 : i32
    return %c0_i32, %c0_i32_0 : i32, i32
  }
  func.func @transform_3(%arg0: i32) -> (i32, i32) {
    %c0_i32 = arith.constant 0 : i32
    %c0_i32_0 = arith.constant 0 : i32
    %c0_i32_1 = arith.constant 0 : i32
    return %c0_i32, %c0_i32_0 : i32, i32
  }
  func.func @transform_4(%arg0: i32) -> (i32, i32) {
    %c0_i32 = arith.constant 0 : i32
    %c0_i32_0 = arith.constant 0 : i32
    %c0_i32_1 = arith.constant 0 : i32
    return %c0_i32, %c0_i32_0 : i32, i32
  }
  func.func @transform_5(%arg0: i32) -> (i32, i32) {
    %c0_i32 = arith.constant 0 : i32
    %c0_i32_0 = arith.constant 0 : i32
    %c0_i32_1 = arith.constant 0 : i32
    return %c0_i32, %c0_i32_0 : i32, i32
  }
  func.func @transform_6(%arg0: i32) -> (i32, i32) {
    %c0_i32 = arith.constant 0 : i32
    %c0_i32_0 = arith.constant 0 : i32
    return %arg0, %c0_i32 : i32, i32
  }
}

</mosaic_0001>

<bundles_post_ra>
// kernel: tpu_custom_call.1
= control target key start
LH: loop header
LB: loop body
LE: loop exit
PB: predicated region body
PF: predicated region fallthrough
CT: control target
= control target key end

     0   :  { %11 = vsyncpa [#allocation3], 0  ;;  %s632_s0 = inlined_call_operand.hbm [shape: f32[2,8], index: 0, kind: input, shape index: {}]   ;;  %s633_s1 = inlined_call_operand.hbm [shape: bf16[2,8,32], index: 1, kind: input, shape index: {}]   ;;  %s634_s2 = inlined_call_operand.hbm [shape: bf16[32,32], index: 2, kind: input, shape index: {}]   ;;  %s635_s3 = inlined_call_operand.vmem [shape: f32[2,32], index: 3, kind: input, shape index: {}]   ;;  %s636_s4 = inlined_call_operand.hbm [shape: bf16[32,64], index: 4, kind: input, shape index: {}]   ;;  %s637_s5 = inlined_call_operand.vmem [shape: f32[1,64], index: 5, kind: input, shape index: {}]   ;;  %s638_s6 = inlined_call_operand.hbm [shape: f32[2,64], index: 6, kind: output, shape index: {}]  }
   0x1   :  { %12 = vsyncpa [#allocation6], 0 }
   0x2   :  { %13 = vsyncpa [#allocation9], 0 }
   0x3   :  { %14 = vsyncpa [#allocation4], 0  ;;  %s494_s21 = smov [#allocation5]   ;;  %s376_s25 = scalar_lea.hbm %s633_s1, 128 }
   0x4   :  { %s30_s22 = sshll.u32 %s494_s21, 4  ;;  %p377_p0 = scmp.ne.s32.totalorder %s633_s1, %s376_s25  ;;  %s31_s22 = int_to_ptr.vmem [resolvable:$true] %s30_s22 }
   0x5   :  { %p380_p1 = scmp.lt.u32.totalorder %s376_s25, %s633_s1 }
   0x7   :  { %p382_p2 = pnand %p380_p1, %p377_p0 }
   0x9   :  { %385 = shalt.err (!%p382_p2)
}
   0xa   :  { %s386_s30 = scalar_lea.vmem %s31_s22, 128  ;;  %p391_p4 = scmp.lt.s32.totalorder %s31_s22, %s31_s22 }
   0xb   :  { %p387_p3 = scmp.ne.s32.totalorder %s31_s22, %s386_s30  ;;  %p392_p5 = scmp.lt.s32.totalorder %s386_s30, %s386_s30 }
   0xd   :  { %p393_p6 = por %p392_p5, %p391_p4 }
   0xf   :  { %p394_p7 = pnand %p393_p6, %p387_p3 }
  0x11   :  { %397 = shalt.err (!%p394_p7)
}
  0x12   :  { %s495_s7 = smov 64   ;;  %s496_s8 = smov 4  }
  0x13   :  { %36 = dma.hbm_to_vmem [thread:$0]  %s633_s1, 128, %s31_s22, [#allocation6], %s495_s7, %s495_s7, %s496_s8  }
  0x14   :  { %s497_s11 = smov [#allocation2]   ;;  %s498_s13 = smov [#allocation7]  }
  0x15   :  { %s21_s12 = sshll.u32 %s497_s11, 4  ;;  %s42_s14 = sshll.u32 %s498_s13, 4  ;;  %s22_s12 = int_to_ptr.vmem [resolvable:$true] %s21_s12  ;;  %s43_s14 = int_to_ptr.vmem [resolvable:$true] %s42_s14 }
  0x16   :  { %s398_s17 = scalar_lea.hbm %s632_s0, 32 }
  0x17   :  { %p399_p8 = scmp.ne.s32.totalorder %s632_s0, %s398_s17  ;;  %p402_p9 = scmp.lt.u32.totalorder %s398_s17, %s632_s0 }
  0x19   :  { %p404_p10 = pnand %p402_p9, %p399_p8 }
  0x1b   :  { %407 = shalt.err (!%p404_p10)
}
  0x1c   :  { %s408_s1 = scalar_lea.vmem %s22_s12, 32  ;;  %p413_p12 = scmp.lt.s32.totalorder %s22_s12, %s22_s12 }
  0x1d   :  { %p409_p11 = scmp.ne.s32.totalorder %s22_s12, %s408_s1  ;;  %p414_p13 = scmp.lt.s32.totalorder %s408_s1, %s408_s1 }
  0x1f   :  { %p415_p0 = por %p414_p13, %p413_p12 }
  0x21   :  { %p416_p1 = pnand %p415_p0, %p409_p11 }
  0x23   :  { %419 = shalt.err (!%p416_p1)
}
  0x24   :  { %24 = dma.hbm_to_vmem [thread:$0]  %s632_s0, 32, %s22_s12, [#allocation3]  }
  0x25   :  { %s420_s26 = scalar_lea.hbm %s634_s2, 256 }
  0x26   :  { %p421_p2 = scmp.ne.s32.totalorder %s634_s2, %s420_s26  ;;  %p424_p3 = scmp.lt.u32.totalorder %s420_s26, %s634_s2 }
  0x28   :  { %p426_p4 = pnand %p424_p3, %p421_p2 }
  0x2a   :  { %429 = shalt.err (!%p426_p4)
}
  0x2b   :  { %s430_s9 = scalar_lea.vmem %s43_s14, 256  ;;  %p435_p6 = scmp.lt.s32.totalorder %s43_s14, %s43_s14 }
  0x2c   :  { %p431_p5 = scmp.ne.s32.totalorder %s43_s14, %s430_s9  ;;  %p436_p7 = scmp.lt.s32.totalorder %s430_s9, %s430_s9 }
  0x2e   :  { %p437_p8 = por %p436_p7, %p435_p6 }
  0x30   :  { %p438_p9 = pnand %p437_p8, %p431_p5 }
  0x32   :  { %441 = shalt.err (!%p438_p9)
}
  0x33   :  { %48 = dma.hbm_to_vmem [thread:$0]  %s634_s2, 256, %s43_s14, [#allocation6], %s495_s7, %s495_s7, %s496_s8  }
  0x34   :  { %s499_s11 = smov [#allocation8]   ;;  %s442_s16 = scalar_lea.hbm %s636_s4, 256 }
  0x35   :  { %s56_s12 = sshll.u32 %s499_s11, 4  ;;  %p443_p10 = scmp.ne.s32.totalorder %s636_s4, %s442_s16  ;;  %s57_s12 = int_to_ptr.vmem [resolvable:$true] %s56_s12 }
  0x36   :  { %p446_p11 = scmp.lt.u32.totalorder %s442_s16, %s636_s4 }
  0x38   :  { %p448_p12 = pnand %p446_p11, %p443_p10 }
  0x3a   :  { %451 = shalt.err (!%p448_p12)
}
  0x3b   :  { %s452_s21 = scalar_lea.vmem %s57_s12, 256  ;;  %p457_p0 = scmp.lt.s32.totalorder %s57_s12, %s57_s12 }
  0x3c   :  { %p453_p13 = scmp.ne.s32.totalorder %s57_s12, %s452_s21  ;;  %p458_p1 = scmp.lt.s32.totalorder %s452_s21, %s452_s21 }
  0x3e   :  { %p459_p2 = por %p458_p1, %p457_p0 }
  0x40   :  { %p460_p3 = pnand %p459_p2, %p453_p13 }
  0x42   :  { %463 = shalt.err (!%p460_p3)
}
  0x43   :  { %62 = dma.hbm_to_vmem [thread:$0]  %s636_s4, 256, %s57_s12, [#allocation9], %s495_s7, %s495_s7, %s496_s8  }
  0x44   :  { %486 = dma.done.wait [#allocation3], 32  }
  0x45   :  { %487 = vsyncadd [#allocation3], 4294967264 }
  0x46   :  { %488 = dma.done.wait [#allocation6], 384  }
  0x47   :  { %489 = vsyncadd [#allocation6], 4294966912 }
  0x48   :  { %490 = dma.done.wait [#allocation9], 256  }
  0x49   :  { %491 = vsyncadd [#allocation9], 4294967040  ;;  %v500_v0 = vmov 0.0   ;;  %vm501_vm0 = vmmov 0   ;;  %v360_v1 = vld [vmem:[#allocation7] sm:$0xff]   ;;  %v361_v2 = vld [vmem:[#allocation7 + $0x8] sm:$0xff]   ;;  %v85_v4 = vlaneseq }
  0x4a   :  { %335 = vmatprep.subr.bf16.mxu0 %v500_v0  ;;  %339 = vmatprep.mubr.msk.bf16.mxu0 %vm501_vm0, %v500_v0  ;;  %v599_v3 = vld [vmem:[#allocation5] sm:$0xff]   ;;  %vm106_vm1 = vcmask 261120   ;;  %v80_v7 = vld [vmem:[%s635_s3] sm:$0x3]  ;;  %vm179_vm2 = vcmask 1041409   ;;  %vm183_vm4 = vcmask 58368  }
  0x4b   :  { %343 = vmatprep.subr.bf16.mxu1 %v500_v0  ;;  %347 = vmatprep.mubr.msk.bf16.mxu1 %vm501_vm0, %v500_v0  ;;  %v86_v5 = vshrl.u32 %v85_v4, 7  ;;  %v170_v23 = vand.u32 127, %v85_v4  ;;  %v165_v26 = vld [vmem:[#allocation2] sm:$0x3]  ;;  %v364_v44 = vld [vmem:[#allocation8 + $0x8] sm:$0xff]   ;;  %v210_v45 = vunpack.c.h.bf16 %v599_v3  ;;  %v209_v46 = vunpack.c.l.bf16 %v599_v3  ;;  %s502_s1 = smov [#allocation10]  }
  0x4c   :  { %336 = vmatpush3.bf16.msra.mxu0 %v360_v1  ;;  %vm166_vm3 = vcmp.gt.f32.partialorder %v165_v26, 0.0  ;;  %v363_v43 = vld [vmem:[#allocation8] sm:$0xff]   ;;  %s310_s22 = sshll.u32 %s502_s1, 4  ;;  %vm302_vm5 = vcmask 517120   ;;  %s311_s22 = int_to_ptr.vmem [resolvable:$true] %s310_s22 }
  0x4d   :  { %337 = vmatprep.subr.bf16.mxu0 %v500_v0  ;;  %v87_v6 = vsub.s32 0, %v86_v5  ;;  %v155_v15 = vsub.s32 1, %v86_v5  ;;  %v173_v25 = vsub.s32 %v170_v23, %v86_v5  ;;  %344 = vmatpush3.bf16.msra.mxu1 %v363_v43  ;;  %s464_s23 = scalar_lea.vmem %s311_s22, 32  ;;  %p469_p5 = scmp.lt.s32.totalorder %s311_s22, %s311_s22 }
  0x4e   :  { %345 = vmatprep.subr.bf16.mxu1 %v500_v0  ;;  %p465_p4 = scmp.ne.s32.totalorder %s311_s22, %s464_s23  ;;  %p470_p6 = scmp.lt.s32.totalorder %s464_s23, %s464_s23 }
  0x4f   :  { %v88_v8 = vrot.slane %v80_v7, %v87_v6  ;;  %v156_v16 = vrot.slane %v80_v7, %v155_v15  ;;  %v325_v7 = vld [vmem:[%s637_s5] ss:$0 sm:$0xff] }
  0x50   :  { %338 = vmatpush3.bf16.msra.mxu0 %v361_v2  ;;  %p471_p7 = por %p470_p6, %p469_p5 }
  0x51   :  { %346 = vmatpush3.bf16.msra.mxu1 %v364_v44 }
  0x52   :  { %p472_p8 = pnand %p471_p7, %p465_p4 }
  0x53   :  { %340 = vmatmul.mubr.msk.bf16.vlgmr.msra.gmra.mrb[0].mxu0 %vm106_vm1, %v599_v3 }
 0x126   :  { %v144_v9 = vpop.f32.mrb[0].mxu0 }
 0x127   :  { %v145_v10 = vadd.f32 %v144_v9, %v88_v8  ;;  %v341_v11 = vpop.f32.mrb[1].mxu0 }
 0x128   :  { %v147_v12 = vpop.f32.mrb[2].mxu0 }
 0x129   :  { %366 = vtanh.f32 %v145_v10  ;;  %v148_v13 = vadd.f32 %v147_v12, %v88_v8  ;;  %v342_v14 = vpop.f32.mrb[3].mxu0 }
 0x12b   :  { %368 = vtanh.f32 %v148_v13 }
 0x133   :  { %v367_v17 = vpop.eup %366 }
 0x134   :  { %v157_v18 = vmul.f32 %v367_v17, %v156_v16 }
 0x135   :  { %v369_v19 = vpop.eup %368 }
 0x136   :  { %v159_v20 = vsel %vm106_vm1, %v157_v18, 0.0  ;;  %v158_v21 = vmul.f32 %v369_v19, %v156_v16 }
 0x137   :  { %160 = vadd.xlane.f32.xlu0 %v159_v20 }
 0x138   :  { %v162_v22 = vsel %vm106_vm1, %v158_v21, 0.0 }
 0x13b   :  { %163 = vadd.xlane.f32.xlu0 %v162_v22 }
 0x1c4   :  { %v161_v24 = vpop.xlane.xlu0 %160 }
 0x1c5   :  { %v174_v28 = vrot.slane %v161_v24, %v173_v25 }
 0x1c8   :  { %v164_v27 = vpop.xlane.xlu0 %163 }
 0x1c9   :  { %v178_v29 = vrot.slane %v164_v27, %v173_v25 }
 0x1cb   :  { %v180_v30 = vsel %vm179_vm2, %v178_v29, %v174_v28 }
 0x1cc   :  { %v182_v31 = vsel %vm166_vm3, %v180_v30, -1e+20 }
 0x1cd   :  { %v184_v32 = vsel %vm183_vm4, %v182_v31, -inf }
 0x1ce   :  { %185 = vmax.xlane.f32.xlu1 %v184_v32 }
 0x25b   :  { %v186_v33 = vpop.xlane.xlu1 %185 }
 0x25c   :  { %v187_v34 = vsub.f32 %v182_v31, %v186_v33 }
 0x25e   :  { %v188_v35 = vmul.f32 1.442695, %v187_v34 }
 0x260   :  { %370 = vpow2.f32 %v188_v35 }
 0x26a   :  { %v371_v36 = vpop.eup %370 }
 0x26b   :  { %v190_v37 = vsel %vm183_vm4, %v371_v36, 0.0 }
 0x26c   :  { %191 = vadd.xlane.f32.xlu1 %v190_v37 }
 0x2f9   :  { %v192_v38 = vpop.xlane.xlu1 %191 }
 0x2fa   :  { %372 = vrcp.f32 %v192_v38 }
 0x304   :  { %v373_v39 = vpop.eup %372 }
 0x305   :  { %v194_v40 = vmul.f32 %v373_v39, %v371_v36 }
 0x307   :  { %v205_v41 = vrot.slane %v194_v40, %v155_v15  ;;  %v198_v42 = vrot.slane %v194_v40, %v87_v6 }
 0x309   :  { %207 = vbcast.lane.b32.xlu1 %v205_v41, 256  ;;  %200 = vbcast.lane.b32.xlu0 %v198_v42, 256 }
 0x37b   :  { %v208_v47 = vpop.permute.xlu1 %207  ;;  %v201_v48 = vpop.permute.xlu0 %200 }
 0x37c   :  { %v212_v49 = vmul.f32 %v210_v45, %v208_v47  ;;  %v211_v50 = vmul.f32 %v209_v46, %v201_v48 }
 0x37e   :  { %v220_v51 = vsel %vm106_vm1, %v212_v49, 0.0  ;;  %v213_v52 = vsel %vm106_vm1, %v211_v50, 0.0 }
 0x37f   :  { %v221_v53 = vrot.slane %v220_v51, 4  ;;  %v214_v54 = vrot.slane %v213_v52, 4 }
 0x381   :  { %v222_v55 = vadd.f32 %v221_v53, %v220_v51  ;;  %v215_v56 = vadd.f32 %v214_v54, %v213_v52 }
 0x383   :  { %v223_v57 = vrot.slane %v222_v55, 2  ;;  %v216_v58 = vrot.slane %v215_v56, 2 }
 0x385   :  { %v224_v59 = vadd.f32 %v223_v57, %v222_v55  ;;  %v217_v60 = vadd.f32 %v216_v58, %v215_v56 }
 0x387   :  { %v225_v61 = vrot.slane %v224_v59, 1  ;;  %v218_v62 = vrot.slane %v217_v60, 1 }
 0x389   :  { %v226_v63 = vadd.f32 %v225_v61, %v224_v59  ;;  %v219_v0 = vadd.f32 %v218_v62, %v217_v60 }
 0x38b   :  { %v228_v1 = vpack.c.bf16 %v226_v63, %v226_v63  ;;  %v227_v2 = vpack.c.bf16 %v219_v0, %v219_v0 }
 0x38d   :  { %v243_v3 = vunpack.c.l.b16 %v228_v1  ;;  %v242_v4 = vunpack.c.l.b16 %v227_v2 }
 0x38f   :  { %v244_v5 = vsel %vm179_vm2, %v243_v3, %v242_v4 }
 0x390   :  { %v245_v6 = vpack.c.b16 %v244_v5, %v244_v5 }
 0x392   :  { %348 = vmatmul.mubr.msk.bf16.vlgmr.msra.gmra.mrb[0].mxu1 %vm106_vm1, %v245_v6 }
 0x465   :  { %v295_v8 = vpop.f32.mrb[0].mxu1 }
 0x466   :  { %v296_v9 = vadd.f32 %v325_v7, %v295_v8  ;;  %v349_v10 = vpop.f32.mrb[1].mxu1 }
 0x467   :  { %v298_v11 = vpop.f32.mrb[2].mxu1 }
 0x468   :  { %374 = vtanh.f32 %v296_v9  ;;  %v350_v12 = vpop.f32.mrb[3].mxu1 }
 0x472   :  { %v375_v13 = vpop.eup %374 }
 0x473   :  { %303 = vst.msk [vmem:[#allocation10] sm:$0x3] %vm302_vm5, %v375_v13 }
 0x474   :  { %475 = shalt.err (!%p472_p8)
}
 0x475   :  { %s476_s25 = scalar_lea.hbm %s638_s6, 32 }
 0x476   :  { %p477_p9 = scmp.ne.s32.totalorder %s638_s6, %s476_s25  ;;  %p480_p10 = scmp.lt.u32.totalorder %s476_s25, %s638_s6 }
 0x478   :  { %p482_p11 = pnand %p480_p10, %p477_p9 }
 0x47a   :  { %485 = shalt.err (!%p482_p11)
}
 0x47b   :  { %313 = dma.vmem_to_hbm [thread:$0]  %s311_s22, 32, %s638_s6, [#allocation4]  }
 0x47c   :  { %492 = dma.done.wait [#allocation4], 32  }
 0x47d   :  { %493 = vsyncadd [#allocation4], 4294967264 }
 0x47e   :  { %317 = vsyncpa [#allocation3], 1 }
 0x47f   :  { %318 = vsyncpa [#allocation6], 1 }
 0x480   :  { %319 = vsyncpa [#allocation9], 1 }
 0x481   :  { %320 = vsyncpa [#allocation4], 1 }

</bundles_post_ra>
